<compile_context>
chip_gen: v5e
topology: v5e:2x2
jax: 0.10.0
libtpu: 0.0.40
codegen_flags: <defaults>
</compile_context>

<pallas_src>
import functools

import jax
import jax.numpy as jnp
from jax.experimental import pallas as pl
from jax.experimental.pallas import tpu as pltpu


def _gap_kernel(x_ref, o_ref, acc_ref, *, inv_hw):
    """Global-average-pool kernel.

    x_ref:   (TR, THW) input block in VMEM
    o_ref:   (TR, 1)   output block
    acc_ref: (TR, 1)   f32 scratch accumulator (lives across the k axis)
    """
    k = pl.program_id(1)

    @pl.when(k == 0)
    def _init():
        acc_ref[...] = jnp.zeros_like(acc_ref)

    # Lane-axis (XLU) reduction over the spatial chunk, accumulated in f32.
    acc_ref[...] += jnp.sum(
        x_ref[...].astype(jnp.float32), axis=-1, keepdims=True)

    @pl.when(k == pl.num_programs(1) - 1)
    def _finalize():
        o_ref[...] = (acc_ref[...] * inv_hw).astype(o_ref.dtype)


def _pick_tiles(rows, hw, itemsize, target_block_bytes):
    """Choose (row_tile, hw_tile) subject to the (8, 128) lowering rules."""
    min_rows = rows if rows < 8 else 8

    # Spatial tile: full H*W unless it is too large; only split if H*W is a
    # multiple of 128 (so every chunk is lane-dense and divides evenly —
    # padded reads on the reduction axis would corrupt the sum).
    thw = hw
    if hw % 128 == 0:
        max_thw = max(128, target_block_bytes // (min_rows * itemsize))
        if hw > max_thw:
            thw = 128
            d = 256
            while d <= max_thw:
                if hw % d == 0:
                    thw = d
                d += 128

    # Row tile: multiple of 8 (or the full row count when rows < 8), sized so
    # one block is ~target_block_bytes.  Partial trailing row blocks are fine:
    # padded rows only pollute outputs that the writeback masks out.
    if rows <= 8:
        tr = rows
    else:
        tr_budget = max(8, (target_block_bytes // (thw * itemsize)) // 8 * 8)
        tr = min(tr_budget, rows // 8 * 8, 1024)
    return tr, thw


def base_model_forward(x_nchw, *, target_block_bytes=4 << 20):
    """Forward of _BaseModel: identity stem/layers/logits + global avg pool.

    Args:
      x_nchw: (N, C, H, W) array (PyTorch NCHW convention).
    Returns:
      (N, C) array, same dtype as the input.
    """
    n, c, h, w = x_nchw.shape
    rows, hw = n * c, h * w

    # Free reshape of the contiguous NCHW tensor (no transpose / extra HBM op).
    x2d = x_nchw.reshape(rows, hw)
    itemsize = jnp.dtype(x2d.dtype).itemsize
    tr, thw = _pick_tiles(rows, hw, itemsize, target_block_bytes)
    grid = (pl.cdiv(rows, tr), hw // thw)

    out = pl.pallas_call(
        functools.partial(_gap_kernel, inv_hw=1.0 / hw),
        out_shape=jax.ShapeDtypeStruct((rows, 1), x2d.dtype),
        grid=grid,
        in_specs=[pl.BlockSpec((tr, thw), lambda r, k: (r, k))],
        out_specs=pl.BlockSpec((tr, 1), lambda r, k: (r, 0)),
        scratch_shapes=[pltpu.VMEM((tr, 1), jnp.float32)],
        compiler_params=pltpu.CompilerParams(
            dimension_semantics=("parallel", "arbitrary")),
    )(x2d)
    return out.reshape(n, c)


if __name__ == "__main__":
    # _BaseModel has no parameters (all sub-Sequentials are empty), so the
    # only input is the activation tensor.
    key = jax.random.PRNGKey(0)

    # Primary check (shapes implied by the module's 4-D NCHW input).
    N, C, H, W = 2, 4, 16, 16
    x = jax.random.normal(key, (N, C, H, W), dtype=jnp.float32)
    y = jax.block_until_ready(base_model_forward(x))
    y_ref = jnp.mean(x, axis=(2, 3))
    assert y.shape == (N, C), y.shape
    assert jnp.allclose(y, y_ref, atol=1e-5, rtol=1e-5)

    # Secondary check: partial row tile (rows not a multiple of the row block).
    key, k1, k2 = jax.random.split(key, 3)
    x2 = jax.random.normal(k1, (3, 5, 20, 24), dtype=jnp.float32)
    y2 = jax.block_until_ready(base_model_forward(x2))
    assert jnp.allclose(y2, jnp.mean(x2, axis=(2, 3)), atol=1e-5, rtol=1e-5)

    # Tertiary check: force the tiled spatial-reduction (accumulator) path by
    # shrinking the per-block budget so H*W is split across the k grid axis.
    x3 = jax.random.normal(k2, (2, 4, 16, 32), dtype=jnp.float32)
    y3 = jax.block_until_ready(base_model_forward(x3, target_block_bytes=8192))
    assert jnp.allclose(y3, jnp.mean(x3, axis=(2, 3)), atol=1e-5, rtol=1e-5)

    print("KERNEL_OK")
</pallas_src>

<mosaic_0001>
module attributes {stable_mosaic.version = 11 : i64} {
  func.func @_gap_kernel(%arg0: i32, %arg1: i32, %arg2: memref<8x256xf32, #tpu.memory_space<vmem>>, %arg3: memref<8x1xf32, #tpu.memory_space<vmem>>, %arg4: memref<8x1xf32, #tpu.memory_space<vmem>>) attributes {dimension_semantics = [#tpu.dimension_semantics<parallel>, #tpu.dimension_semantics<arbitrary>], iteration_bounds = array<i64: 1, 1>, scalar_prefetch = 0 : i64, scratch_operands = 1 : i64, tpu.core_type = #tpu.core_type<tc>, window_params = [{transform_indices = @transform_0, window_bounds = array<i64: 8, 256>}, {transform_indices = @transform_1, window_bounds = array<i64: 8, 1>}]} {
    %c0_i32 = arith.constant 0 : i32
    %0 = arith.cmpi eq, %arg1, %c0_i32 : i32
    %1 = arith.extui %0 : i1 to i32
    %c0_i32_0 = arith.constant 0 : i32
    %2 = arith.cmpi ne, %1, %c0_i32_0 : i32
    scf.if %2 {
      %cst_8 = arith.constant 0.000000e+00 : f32
      %12 = vector.broadcast %cst_8 : f32 to vector<8x1xf32>
      %c0_9 = arith.constant 0 : index
      %c0_10 = arith.constant 0 : index
      %13 = vector.load %arg4[%c0_9, %c0_10] : memref<8x1xf32, #tpu.memory_space<vmem>>, vector<8x1xf32>
      tpu.vector_store %arg4[%c0_9, %c0_10], %12 {strides = array<i32>} : memref<8x1xf32, #tpu.memory_space<vmem>>, vector<8x1xf32>,
    } else {
    }
    %c0 = arith.constant 0 : index
    %c0_1 = arith.constant 0 : index
    %3 = vector.load %arg4[%c0, %c0_1] : memref<8x1xf32, #tpu.memory_space<vmem>>, vector<8x1xf32>
    %c0_2 = arith.constant 0 : index
    %c0_3 = arith.constant 0 : index
    %4 = vector.load %arg2[%c0_2, %c0_3] : memref<8x256xf32, #tpu.memory_space<vmem>>, vector<8x256xf32>
    %cst = arith.constant dense<0.000000e+00> : vector<8xf32>
    %5 = vector.multi_reduction <add>, %4, %cst [1] : vector<8x256xf32> to vector<8xf32>
    %6 = vector.shape_cast %5 : vector<8xf32> to vector<8x1xf32>
    %7 = arith.addf %3, %6 : vector<8x1xf32>
    %c0_4 = arith.constant 0 : index
    %c0_5 = arith.constant 0 : index
    %8 = vector.load %arg4[%c0_4, %c0_5] : memref<8x1xf32, #tpu.memory_space<vmem>>, vector<8x1xf32>
    tpu.vector_store %arg4[%c0_4, %c0_5], %7 {strides = array<i32>} : memref<8x1xf32, #tpu.memory_space<vmem>>, vector<8x1xf32>,
    %c0_i32_6 = arith.constant 0 : i32
    %9 = arith.cmpi eq, %arg1, %c0_i32_6 : i32
    %10 = arith.extui %9 : i1 to i32
    %c0_i32_7 = arith.constant 0 : i32
    %11 = arith.cmpi ne, %10, %c0_i32_7 : i32
    scf.if %11 {
      %c0_8 = arith.constant 0 : index
      %c0_9 = arith.constant 0 : index
      %12 = vector.load %arg4[%c0_8, %c0_9] : memref<8x1xf32, #tpu.memory_space<vmem>>, vector<8x1xf32>
      %cst_10 = arith.constant 3.906250e-03 : f32
      %13 = vector.broadcast %cst_10 : f32 to vector<8x1xf32>
      %14 = arith.mulf %12, %13 : vector<8x1xf32>
      %c0_11 = arith.constant 0 : index
      %c0_12 = arith.constant 0 : index
      %15 = vector.load %arg3[%c0_11, %c0_12] : memref<8x1xf32, #tpu.memory_space<vmem>>, vector<8x1xf32>
      tpu.vector_store %arg3[%c0_11, %c0_12], %14 {strides = array<i32>} : memref<8x1xf32, #tpu.memory_space<vmem>>, vector<8x1xf32>,
    } else {
    }
    return
  }
  func.func @transform_0(%arg0: i32, %arg1: i32) -> (i32, i32) {
    %c0_i32 = arith.constant 0 : i32
    return %arg0, %arg1 : i32, i32
  }
  func.func @transform_1(%arg0: i32, %arg1: i32) -> (i32, i32) {
    %c0_i32 = arith.constant 0 : i32
    %c0_i32_0 = arith.constant 0 : i32
    return %arg0, %c0_i32 : i32, i32
  }
}

</mosaic_0001>

<bundles_post_ra>
// kernel: tpu_custom_call.1
= control target key start
LH: loop header
LB: loop body
LE: loop exit
PB: predicated region body
PF: predicated region fallthrough
CT: control target
= control target key end

     0   :  { %6 = vsyncpa [#allocation4], 0  ;;  %s76_s9 = smov [#allocation3]   ;;  %s94_s0 = inlined_call_operand.hbm [shape: f32[8,256], index: 0, kind: input, shape index: {}]   ;;  %s95_s1 = inlined_call_operand.vmem [shape: f32[8,1], index: 1, kind: output, shape index: {}]  }
   0x1   :  { %s12_s8 = sshll.u32 %s94_s0, 4  ;;  %s14_s10 = sshll.u32 %s76_s9, 4  ;;  %s13_s8 = int_to_ptr.hbm [resolvable:$true] %s12_s8  ;;  %s15_s10 = int_to_ptr.vmem [resolvable:$true] %s14_s10 }
   0x2   :  { %17 = dma.hbm_to_vmem [thread:$0]  %s13_s8, 256, %s15_s10, [#allocation4]  }
   0x3   :  { %74 = dma.done.wait [#allocation4], 256  }
   0x4   :  { %75 = vsyncadd [#allocation4], 4294967040  ;;  %vm26_vm0 = vcmask 7168   ;;  %v77_v0 = vmov 0.0   ;;  %v29_v1 = vld [vmem:[#allocation3] sm:$0xff]  ;;  %v30_v2 = vld [vmem:[#allocation3 + $0x8] sm:$0xff] }
   0x5   :  { %27 = vst.msk [vmem:[#allocation2] sm:$0xff] %vm26_vm0, %v77_v0  ;;  %v31_v3 = vadd.f32 %v30_v2, %v29_v1 }
   0x7   :  { %32 = vadd.xlane.f32.xlu0 %v31_v3 }
   0xc   :  { %v28_v4 = vld [vmem:[#allocation2] sm:$0xff] }
  0x7a   :  { %v33_v5 = vpop.xlane.xlu0 %32 }
  0x7b   :  { %v34_v6 = vadd.f32 %v33_v5, %v28_v4 }
  0x7d   :  { %36 = vst.msk [vmem:[#allocation2] sm:$0xff] %vm26_vm0, %v34_v6 }
  0x84   :  { %v40_v7 = vld [vmem:[#allocation2] sm:$0xff] }
  0x85   :  { %v41_v8 = vmul.f32 0.00390625, %v40_v7 }
  0x87   :  { %42 = vst.msk [vmem:[%s95_s1] sm:$0xff] %vm26_vm0, %v41_v8 }
  0x88   :  { %47 = vsyncpa [#allocation4], 1 }

</bundles_post_ra>
